<compile_context>
chip_gen: v7x
topology: tpu7x:2x2x1
jax: 0.10.0
libtpu: 0.0.40
codegen_flags: <defaults>
</compile_context>

<pallas_src>
import math

import jax
import jax.numpy as jnp
from jax.experimental import pallas as pl
from jax.experimental.pallas import tpu as pltpu


def _resolve_view(in_shape, view):
    """Resolve (None, -1)-style view specs exactly like torch.Tensor.view."""
    view = list(view)
    if view and view[0] is None:
        view[0] = in_shape[0]
    total = math.prod(in_shape)
    neg = [i for i, d in enumerate(view) if d == -1]
    assert len(neg) <= 1, "view spec may contain at most one -1"
    if neg:
        known = math.prod(d for i, d in enumerate(view) if i != neg[0])
        assert known > 0 and total % known == 0, "view spec incompatible with input size"
        view[neg[0]] = total // known
    out_shape = tuple(int(d) for d in view)
    assert math.prod(out_shape) == total, "view spec incompatible with input size"
    return out_shape


def _lane_dense_slab(total, max_cols=32768):
    """Factor `total` elements into (rows, cols), cols a large multiple of 128
    when possible.  Falls back to a single contiguous row (fine for HBM->HBM
    DMA -- no VMEM tiling constraints apply)."""
    if total % 128 == 0:
        cols = (min(total, max_cols) // 128) * 128
        while cols >= 128:
            if total % cols == 0:
                return total // cols, cols
            cols -= 128
    return 1, total


def _make_dma_copy_kernel(row_chunks):
    """Chunked HBM->HBM memcpy.  All DMAs are started before the first wait so
    they stay in flight concurrently on the DMA engines."""
    def kernel(x_ref, o_ref, sem):
        copies = []
        for idx, (start, size) in enumerate(row_chunks):
            cp = pltpu.make_async_copy(
                x_ref.at[pl.ds(start, size), :],
                o_ref.at[pl.ds(start, size), :],
                sem.at[idx],
            )
            cp.start()
            copies.append(cp)
        for cp in copies:
            cp.wait()
    return kernel


def _pallas_copy_reshaped(x, out_shape):
    """Materialize the reshaped tensor with a direct HBM->HBM DMA copy."""
    total = math.prod(x.shape)
    if total == 0:
        return jnp.reshape(x, out_shape)

    rows, cols = _lane_dense_slab(total)
    x2 = jnp.reshape(x, (rows, cols))  # metadata-only (contiguous row-major)

    # Up to 8 static row chunks -> multiple concurrent DMAs for large copies.
    n_chunks = max(1, min(8, rows))
    base, rem = divmod(rows, n_chunks)
    chunks, start = [], 0
    for i in range(n_chunks):
        size = base + (1 if i < rem else 0)
        if size:
            chunks.append((start, size))
            start += size

    y2 = pl.pallas_call(
        _make_dma_copy_kernel(chunks),
        out_shape=jax.ShapeDtypeStruct((rows, cols), x.dtype),
        in_specs=[pl.BlockSpec(memory_space=pl.ANY)],   # stay in HBM, no auto-DMA
        out_specs=pl.BlockSpec(memory_space=pl.ANY),    # stay in HBM
        scratch_shapes=[pltpu.SemaphoreType.DMA((len(chunks),))],
    )(x2)

    return jnp.reshape(y2, out_shape)  # metadata-only


def pallas_view(x, view=(None, -1), materialize=False):
    """Reproduce View.forward(x).

    Default path (materialize=False): metadata-only jnp.reshape -- zero HBM
    traffic, exactly what torch .view does on a contiguous tensor.

    materialize=True: produce a fresh buffer via a Pallas HBM->HBM DMA copy
    kernel (no VMEM round trip).
    """
    out_shape = _resolve_view(x.shape, view)
    if not materialize:
        return jnp.reshape(x, out_shape)
    return _pallas_copy_reshaped(x, out_shape)


if __name__ == "__main__":
    key = jax.random.PRNGKey(0)
    B, C, H, W = 2, 4, 16, 16
    x = jax.random.normal(key, (B, C, H, W), dtype=jnp.float32)

    # Reference: torch .view on a contiguous NCHW tensor == row-major reshape.
    ref = jnp.reshape(x, (B, -1))

    # Recommended path: metadata-only, no kernel.
    out_meta = jax.block_until_ready(pallas_view(x, view=(None, -1)))
    assert out_meta.shape == (B, C * H * W)
    assert jnp.array_equal(out_meta, ref)

    # Materializing path: run the Pallas HBM->HBM DMA copy kernel once.
    out = jax.block_until_ready(pallas_view(x, view=(None, -1), materialize=True))
    assert out.shape == (B, C * H * W), out.shape
    assert out.dtype == x.dtype
    assert jnp.array_equal(out, ref), "Pallas view mismatch vs reference reshape"

    print("KERNEL_OK")
</pallas_src>

<mosaic_0001>
module attributes {stable_mosaic.version = 11 : i64} {
  func.func @kernel(%arg0: memref<1x2048xf32, #tpu.memory_space<any>>, %arg1: memref<1x2048xf32, #tpu.memory_space<any>>, %arg2: memref<1x!tpu.dma_semaphore, #tpu.memory_space<semaphore_mem>>) attributes {dimension_semantics = [], scalar_prefetch = 0 : i64, scratch_operands = 1 : i64, tpu.core_type = #tpu.core_type<tc>} {
    %c0_i32 = arith.constant 0 : i32
    %c0_i32_0 = arith.constant 0 : i32
    %c0_i32_1 = arith.constant 0 : i32
    %0 = tpu.memref_slice %arg0[%c0_i32_0, %c0_i32_1] : memref<1x2048xf32, #tpu.memory_space<any>> -> memref<1x2048xf32, #tpu.memory_space<any>>
    %c0_i32_2 = arith.constant 0 : i32
    %c0_i32_3 = arith.constant 0 : i32
    %1 = tpu.memref_slice %arg1[%c0_i32_2, %c0_i32_3] : memref<1x2048xf32, #tpu.memory_space<any>> -> memref<1x2048xf32, #tpu.memory_space<any>>
    %2 = tpu.memref_slice %arg2[%c0_i32] : memref<1x!tpu.dma_semaphore, #tpu.memory_space<semaphore_mem>> -> memref<1x!tpu.dma_semaphore, #tpu.memory_space<semaphore_mem>>
    %3 = tpu.memref_squeeze %2 : memref<1x!tpu.dma_semaphore, #tpu.memory_space<semaphore_mem>> -> memref<!tpu.dma_semaphore, #tpu.memory_space<semaphore_mem>>
    tpu.enqueue_dma source(%0 : memref<1x2048xf32, #tpu.memory_space<any>>) target(%1 : memref<1x2048xf32, #tpu.memory_space<any>>) target_semaphore(%3 : memref<!tpu.dma_semaphore, #tpu.memory_space<semaphore_mem>>)
    %c0_i32_4 = arith.constant 0 : i32
    %c0_i32_5 = arith.constant 0 : i32
    %c0_i32_6 = arith.constant 0 : i32
    %4 = tpu.memref_slice %arg0[%c0_i32_5, %c0_i32_6] : memref<1x2048xf32, #tpu.memory_space<any>> -> memref<1x2048xf32, #tpu.memory_space<any>>
    %c0_i32_7 = arith.constant 0 : i32
    %c0_i32_8 = arith.constant 0 : i32
    %5 = tpu.memref_slice %arg1[%c0_i32_7, %c0_i32_8] : memref<1x2048xf32, #tpu.memory_space<any>> -> memref<1x2048xf32, #tpu.memory_space<any>>
    %6 = tpu.memref_slice %arg2[%c0_i32_4] : memref<1x!tpu.dma_semaphore, #tpu.memory_space<semaphore_mem>> -> memref<1x!tpu.dma_semaphore, #tpu.memory_space<semaphore_mem>>
    %7 = tpu.memref_squeeze %6 : memref<1x!tpu.dma_semaphore, #tpu.memory_space<semaphore_mem>> -> memref<!tpu.dma_semaphore, #tpu.memory_space<semaphore_mem>>
    tpu.wait_dma2 semaphore(%7 : memref<!tpu.dma_semaphore, #tpu.memory_space<semaphore_mem>>) src(%4 : memref<1x2048xf32, #tpu.memory_space<any>>) dst(%5 : memref<1x2048xf32, #tpu.memory_space<any>>)
    return
  }
}

</mosaic_0001>

<bundles_post_ra>
// kernel: tpu_custom_call.1
= control target key start
LH: loop header
LB: loop body
LE: loop exit
PB: predicated region body
PF: predicated region fallthrough
CT: control target
= control target key end

     0   :  { %s34_s6 = smov [#allocation2]   ;;  %s35_s7 = smov [#allocation3]   ;;  %s53_s0 = inlined_call_operand.hbm [shape: f32[1,2048], index: 0, kind: input, shape index: {}]   ;;  %s54_s1 = inlined_call_operand.hbm [shape: f32[1,2048], index: 1, kind: output, shape index: {}]  }
   0x1   :  { %s36_s8 = smov 0  }
   0x2   :  { %18 = dma.general %s53_s0, 256, %s54_s1, %s34_s6, %s35_s7, [#allocation4], %s36_s8, 0  }
   0x3   :  { %32 = dma.done.wait [#allocation2], 256 }
   0x4   :  { %33 = vsyncadd [#allocation2], 4294967040 }
   0x5   :  { %22 = vsyncmov [#allocation2] }
   0x8   :  { %s23_s13 = vpop.sfrf %22 }
   0x9   :  { %p28_p0 = scmp.ne.s32.totalorder %s23_s13, 0 }
   0xb   :  { %27 = shalt.err (%p28_p0)  }

</bundles_post_ra>
